<compile_context>
chip_gen: v5e
topology: v5e:2x2
jax: 0.10.0
libtpu: 0.0.40
codegen_flags: <defaults>
</compile_context>

<pallas_src>
import functools
import math

import jax
import jax.numpy as jnp
import numpy as np
from jax.experimental import pallas as pl
from jax.experimental.pallas import tpu as pltpu  # noqa: F401  (TPU backend)

HIDDEN = 32
NUM_HEADS = 2
HEAD_DIM = HIDDEN // NUM_HEADS            # 16
ROT_DIM = HIDDEN // (NUM_HEADS * 2)       # 8  (position_encoding_2d=True)
SEQ = 8
BATCH = 2
LAYER_ID = 3
MAX_POS = 32
PARAM_DTYPE = jnp.bfloat16


# ----------------------------- fused Pallas kernel -----------------------------

def _glm_mha_kernel(x_ref, wf_ref, bf_ref, bd_ref, cos_ref, sin_ref, mbias_ref,
                    o_ref, *, inv_sqrt_hd, nh, hd, batch, sq):
    """Single invocation: QKV(+rot)+folded-dense projection, 2D rope, attention, for all batches.

    x_ref    : [sq, b*H]        bf16  free [sq,b,H]->[sq,b*H] flattening (batch bi = cols bi*H:)
    wf_ref   : [H, 4H + nh*H]   bf16  [Wq^T | Wk^T | Wq^T.Rot | Wk^T.Rot | Wv_0^T@Wd_0 | Wv_1^T@Wd_1]
    bf_ref   : [1, 4H + nh*H]   f32   matching fused bias (zeros for the folded V' columns)
    bd_ref   : [1, H]           f32   constant output bias  bv @ Wd^T + bd
    cos_ref  : [sq, b*H]        bf16  per-row 2D-rope cos, tiled over heads (same layout as x)
    sin_ref  : [sq, b*H]        bf16
    mbias_ref: [b*nh*sq, sq]    f32   additive mask bias (-10000*coeff or 0), (batch,head)-stacked
    o_ref    : [sq, b*H]        bf16
    """
    H = nh * hd
    x = x_ref[...]
    cos = cos_ref[...].astype(jnp.float32)
    sin = sin_ref[...].astype(jnp.float32)
    wf = wf_ref[...]
    bf = bf_ref[...]

    qs, ks, vps = [], [], []
    for bi in range(batch):                           # unrolled at trace time
        lo = bi * H
        # One wide MXU push per batch: q, k, rotate_half(q), rotate_half(k), V' (dense folded in).
        proj = jnp.dot(x[:, lo:lo + H], wf, preferred_element_type=jnp.float32) + bf
        c = cos[:, lo:lo + H]
        s_ = sin[:, lo:lo + H]
        # 2D rotary, elementwise in f32 (rotate_half baked into weight columns 2H..4H).
        qs.append((proj[:, 0:H] * c + proj[:, 2 * H:3 * H] * s_).astype(x.dtype))
        ks.append((proj[:, H:2 * H] * c + proj[:, 3 * H:4 * H] * s_).astype(x.dtype))
        vps.append(proj[:, 4 * H:])                   # f32 [sq, nh*H], already projected by Wd

    # All (batch, head) score tiles stacked along sublanes -> softmax runs once over [b*nh*sq, sq].
    scores = []
    for bi in range(batch):
        for h in range(nh):
            c0 = h * hd
            scores.append(jax.lax.dot_general(
                qs[bi][:, c0:c0 + hd], ks[bi][:, c0:c0 + hd],
                (((1,), (1,)), ((), ())), preferred_element_type=jnp.float32))
    s = jnp.concatenate(scores, axis=0) * inv_sqrt_hd + mbias_ref[...]
    s = s - jnp.max(s, axis=-1, keepdims=True)
    e = jnp.exp(s)
    p = e * pl.reciprocal(jnp.sum(e, axis=-1, keepdims=True), approx=True)   # f32 probs

    # out_b = sum_h P_bh @ V'_bh  (dense projection already folded), then the constant bias.
    outs = []
    for bi in range(batch):
        acc = jnp.zeros((sq, H), jnp.float32)
        for h in range(nh):
            r0 = (bi * nh + h) * sq
            p_bh = p[r0:r0 + sq, :].astype(x.dtype)                    # [sq, sq] bf16
            v_bh = vps[bi][:, h * H:(h + 1) * H].astype(x.dtype)      # [sq, H] bf16
            acc = acc + jnp.dot(p_bh, v_bh, preferred_element_type=jnp.float32)
        outs.append(acc + bd_ref[...])
    o_ref[...] = jnp.concatenate(outs, axis=-1).astype(o_ref.dtype)   # single full-width store


# ----------------------------- parameters -----------------------------

def init_params(key):
    ks = jax.random.split(key, 8)
    std = 1.0 / math.sqrt(HIDDEN)
    w = lambda k: (jax.random.normal(k, (HIDDEN, HIDDEN), jnp.float32) * std).astype(PARAM_DTYPE)
    bvec = lambda k: (jax.random.normal(k, (HIDDEN,), jnp.float32) * std).astype(PARAM_DTYPE)
    params = {
        "wq": w(ks[0]), "bq": bvec(ks[1]),
        "wk": w(ks[2]), "bk": bvec(ks[3]),
        "wv": w(ks[4]), "bv": bvec(ks[5]),
        "wd": w(ks[6]), "bd": bvec(ks[7]),
    }
    # RotaryEmbedding cache (dim = ROT_DIM, base = 10000, precision = half -> bf16)
    inv_freq = 1.0 / (10000.0 ** (jnp.arange(0, ROT_DIM, 2, dtype=jnp.float32) / ROT_DIM))
    t = jnp.arange(MAX_POS, dtype=jnp.float32)
    freqs = jnp.einsum("i,j->ij", t, inv_freq)
    emb = jnp.concatenate([freqs, freqs], axis=-1)             # [MAX_POS, ROT_DIM]
    params["cos_cached"] = jnp.cos(emb).astype(PARAM_DTYPE)
    params["sin_cached"] = jnp.sin(emb).astype(PARAM_DTYPE)
    return params


def prepare_fused_params(params):
    """One-time weight prep (f32 math, one final bf16 rounding):
      * pre-transpose Q/K to [in, out] and append rotate_half columns (exact signed permutation),
      * fold the dense projection into V:  Wv'_h = Wv_h^T @ Wd_h  (softmax rows sum to 1, so the
        V bias folds exactly into the constant output bias  bv @ Wd^T + bd)."""
    H, nh, hd = HIDDEN, NUM_HEADS, HEAD_DIM
    shift = ROT_DIM // 2
    d = np.arange(H)
    first = (d % ROT_DIM) < shift
    perm = np.where(first, d + shift, d - shift)
    sign = jnp.asarray(np.where(first, -1.0, 1.0), jnp.float32)

    wq_t = params["wq"].astype(jnp.float32).T
    wk_t = params["wk"].astype(jnp.float32).T
    wv_t = params["wv"].astype(jnp.float32).T
    wd_t = params["wd"].astype(jnp.float32).T          # [in, out]
    bq = params["bq"].astype(jnp.float32)
    bk = params["bk"].astype(jnp.float32)
    bv = params["bv"].astype(jnp.float32)
    bd = params["bd"].astype(jnp.float32)

    wq_rot = wq_t[:, perm] * sign
    wk_rot = wk_t[:, perm] * sign
    bq_rot = bq[perm] * sign
    bk_rot = bk[perm] * sign

    wv_prime = jnp.concatenate(
        [wv_t[:, h * hd:(h + 1) * hd] @ wd_t[h * hd:(h + 1) * hd, :] for h in range(nh)],
        axis=1)                                                        # [H, nh*H]

    wfused = jnp.concatenate([wq_t, wk_t, wq_rot, wk_rot, wv_prime], axis=1).astype(PARAM_DTYPE)
    bfused = jnp.concatenate([bq, bk, bq_rot, bk_rot,
                              jnp.zeros(nh * H, jnp.float32)]).reshape(1, 4 * H + nh * H)
    bd_eff = (bv @ wd_t + bd).reshape(1, H)                            # f32 constant output bias
    return {"wfused": wfused, "bfused": bfused, "bd_eff": bd_eff}


def prepare_rope(params, position_ids):
    """Hoisted out of the per-call path: depends only on position_ids. Returns cos/sin in the same
    [sq, b*H] layout as the flattened hidden_states (per-head cos = [cos(pos) | cos(block)])."""
    b, _, sq = position_ids.shape
    pos = position_ids[:, 0, :]
    blk = position_ids[:, 1, :]
    cos_c, sin_c = params["cos_cached"], params["sin_cached"]
    cos = jnp.tile(jnp.concatenate([cos_c[pos], cos_c[blk]], axis=-1), (1, 1, NUM_HEADS))
    sin = jnp.tile(jnp.concatenate([sin_c[pos], sin_c[blk]], axis=-1), (1, 1, NUM_HEADS))
    cos = jnp.transpose(cos, (1, 0, 2)).reshape(sq, b * HIDDEN)
    sin = jnp.transpose(sin, (1, 0, 2)).reshape(sq, b * HIDDEN)
    return cos, sin


def prepare_mask_bias(attention_mask, layer_id):
    """Hoisted: additive f32 bias (-10000*coeff at masked positions), stacked as [b*nh*sq, sq]."""
    b, _, sq, _ = attention_mask.shape
    coeff = float(layer_id + 1)
    mb = jnp.where(attention_mask.reshape(b, sq, sq), -10000.0 * coeff, 0.0).astype(jnp.float32)
    return jnp.broadcast_to(mb[:, None], (b, NUM_HEADS, sq, sq)).reshape(b * NUM_HEADS * sq, sq)


# ----------------------------- forward -----------------------------

@jax.jit
def glm_mha_forward(fused, hidden_states, cos_full, sin_full, mask_bias):
    # TODO(synk): layer_past KV-cache concat / use_cache "present" path not implemented
    #             (dynamic-length cache); forward matches layer_past=None, use_cache=False.
    sq, b, H = hidden_states.shape
    nh, hd = NUM_HEADS, HEAD_DIM
    x2d = hidden_states.reshape(sq, b * H)            # contiguous -> free reshape, no transpose

    kern = functools.partial(_glm_mha_kernel, inv_sqrt_hd=1.0 / math.sqrt(hd),
                             nh=nh, hd=hd, batch=b, sq=sq)
    z2 = lambda i: (0, 0)
    out2d = pl.pallas_call(
        kern,
        out_shape=jax.ShapeDtypeStruct((sq, b * H), hidden_states.dtype),
        grid=(1,),                                     # single step: whole problem in one body
        in_specs=[
            pl.BlockSpec((sq, b * H), z2),             # x (flattened, full block)
            pl.BlockSpec(fused["wfused"].shape, z2),   # fused weight [H, 4H+nh*H]
            pl.BlockSpec(fused["bfused"].shape, z2),   # fused bias (f32)
            pl.BlockSpec(fused["bd_eff"].shape, z2),   # constant output bias (f32)
            pl.BlockSpec((sq, b * H), z2),             # cos
            pl.BlockSpec((sq, b * H), z2),             # sin
            pl.BlockSpec(mask_bias.shape, z2),         # additive mask bias (f32)
        ],
        out_specs=pl.BlockSpec((sq, b * H), z2),
    )(x2d, fused["wfused"], fused["bfused"], fused["bd_eff"], cos_full, sin_full, mask_bias)

    out = out2d.reshape(sq, b, H)                      # free reshape back to [sq, b, H]
    present = None
    return out, present


# ----------------------------- pure-JAX reference -----------------------------

def ref_forward(params, hidden_states, position_ids, attention_mask, layer_id):
    sq, b, H = hidden_states.shape
    nh, hd = NUM_HEADS, HEAD_DIM

    def lin(x, w, bias):
        acc = jnp.dot(x, w.T, preferred_element_type=jnp.float32) + bias.astype(jnp.float32)
        return acc.astype(PARAM_DTYPE)

    x2d = hidden_states.reshape(sq * b, H)
    q = lin(x2d, params["wq"], params["bq"]).reshape(sq, b, nh, hd)
    k = lin(x2d, params["wk"], params["bk"]).reshape(sq, b, nh, hd)
    v = lin(x2d, params["wv"], params["bv"]).reshape(sq, b, nh, hd)

    r = hd // 2
    rot_half = lambda x: jnp.concatenate([-x[..., r // 2:], x[..., : r // 2]], axis=-1)
    pos = position_ids[:, 0, :].T
    blk = position_ids[:, 1, :].T
    cos1 = params["cos_cached"][pos][:, :, None, :]
    sin1 = params["sin_cached"][pos][:, :, None, :]
    cos2 = params["cos_cached"][blk][:, :, None, :]
    sin2 = params["sin_cached"][blk][:, :, None, :]
    q1, q2 = q[..., :r], q[..., r:]
    k1, k2 = k[..., :r], k[..., r:]
    q1 = q1 * cos1 + rot_half(q1) * sin1
    k1 = k1 * cos1 + rot_half(k1) * sin1
    q2 = q2 * cos2 + rot_half(q2) * sin2
    k2 = k2 * cos2 + rot_half(k2) * sin2
    q = jnp.concatenate([q1, q2], axis=-1)
    k = jnp.concatenate([k1, k2], axis=-1)

    coeff = float(layer_id + 1)
    scale = 1.0 / (math.sqrt(hd) * coeff)
    qb = q.reshape(sq, b * nh, hd).transpose(1, 0, 2)
    kb = k.reshape(sq, b * nh, hd).transpose(1, 0, 2)
    vb = v.reshape(sq, b * nh, hd).transpose(1, 0, 2)
    qb = (qb.astype(jnp.float32) * scale).astype(PARAM_DTYPE)
    scores = jnp.einsum("bqd,bkd->bqk", qb, kb, preferred_element_type=jnp.float32)
    mask = jnp.broadcast_to(attention_mask, (b, nh, sq, sq)).reshape(b * nh, sq, sq)
    scores = jnp.where(mask, -10000.0, scores) * coeff
    probs = jax.nn.softmax(scores, axis=-1).astype(PARAM_DTYPE)
    ctx = jnp.einsum("bqk,bkd->bqd", probs, vb,
                     preferred_element_type=jnp.float32).astype(PARAM_DTYPE)
    ctx = ctx.reshape(b, nh, sq, hd).transpose(2, 0, 1, 3).reshape(sq, b, H)
    return lin(ctx.reshape(sq * b, H), params["wd"], params["bd"]).reshape(sq, b, H)


# ----------------------------- main -----------------------------

if __name__ == "__main__":
    key = jax.random.PRNGKey(0)
    pkey, hkey = jax.random.split(key)
    params = init_params(pkey)
    fused = prepare_fused_params(params)

    hidden_states = jax.random.normal(hkey, (SEQ, BATCH, HIDDEN), jnp.float32).astype(PARAM_DTYPE)
    pos_row = jnp.broadcast_to(jnp.arange(SEQ, dtype=jnp.int32), (BATCH, SEQ))
    blk_row = jnp.broadcast_to(
        jnp.concatenate([jnp.zeros(SEQ - 2, jnp.int32), jnp.array([1, 2], jnp.int32)]),
        (BATCH, SEQ))
    position_ids = jnp.stack([pos_row, blk_row], axis=1)                     # [b, 2, sq]
    attention_mask = (jnp.arange(SEQ)[None, :] > jnp.arange(SEQ)[:, None])[None, None]
    attention_mask = jnp.broadcast_to(attention_mask, (BATCH, 1, SEQ, SEQ))  # bool, True = masked

    # Hoisted (position/mask-only) prep — not part of the per-call path.
    cos_full, sin_full = prepare_rope(params, position_ids)
    mask_bias = prepare_mask_bias(attention_mask, LAYER_ID)

    out, present = glm_mha_forward(fused, hidden_states, cos_full, sin_full, mask_bias)
    out = jax.block_until_ready(out)

    ref = ref_forward(params, hidden_states, position_ids, attention_mask, LAYER_ID)
    assert out.shape == (SEQ, BATCH, HIDDEN) and out.dtype == PARAM_DTYPE
    assert jnp.allclose(out.astype(jnp.float32), ref.astype(jnp.float32),
                        atol=6e-2, rtol=6e-2), "Pallas output mismatch vs JAX reference"
    print("KERNEL_OK")
</pallas_src>

<mosaic_0001>
module attributes {stable_mosaic.version = 11 : i64} {
  func.func @_glm_mha_kernel(%arg0: i32, %arg1: memref<8x64xbf16, #tpu.memory_space<vmem>>, %arg2: memref<32x192xbf16, #tpu.memory_space<vmem>>, %arg3: memref<1x192xf32, #tpu.memory_space<vmem>>, %arg4: memref<1x32xf32, #tpu.memory_space<vmem>>, %arg5: memref<8x64xbf16, #tpu.memory_space<vmem>>, %arg6: memref<8x64xbf16, #tpu.memory_space<vmem>>, %arg7: memref<32x8xf32, #tpu.memory_space<vmem>>, %arg8: memref<8x64xbf16, #tpu.memory_space<vmem>>) attributes {dimension_semantics = [#tpu.dimension_semantics<arbitrary>], iteration_bounds = array<i64: 1>, scalar_prefetch = 0 : i64, scratch_operands = 0 : i64, tpu.core_type = #tpu.core_type<tc>, window_params = [{pipeline_mode = #tpu.pipeline_mode<synchronous>, transform_indices = @transform_0, window_bounds = array<i64: 8, 64>}, {pipeline_mode = #tpu.pipeline_mode<synchronous>, transform_indices = @transform_1, window_bounds = array<i64: 32, 192>}, {pipeline_mode = #tpu.pipeline_mode<synchronous>, transform_indices = @transform_2, window_bounds = array<i64: 1, 192>}, {pipeline_mode = #tpu.pipeline_mode<synchronous>, transform_indices = @transform_3, window_bounds = array<i64: 1, 32>}, {pipeline_mode = #tpu.pipeline_mode<synchronous>, transform_indices = @transform_4, window_bounds = array<i64: 8, 64>}, {pipeline_mode = #tpu.pipeline_mode<synchronous>, transform_indices = @transform_5, window_bounds = array<i64: 8, 64>}, {pipeline_mode = #tpu.pipeline_mode<synchronous>, transform_indices = @transform_6, window_bounds = array<i64: 32, 8>}, {pipeline_mode = #tpu.pipeline_mode<synchronous>, transform_indices = @transform_7, window_bounds = array<i64: 8, 64>}]} {
    %c0 = arith.constant 0 : index
    %c0_0 = arith.constant 0 : index
    %0 = vector.load %arg1[%c0, %c0_0] : memref<8x64xbf16, #tpu.memory_space<vmem>>, vector<8x64xbf16>
    %c0_1 = arith.constant 0 : index
    %c0_2 = arith.constant 0 : index
    %1 = vector.load %arg5[%c0_1, %c0_2] : memref<8x64xbf16, #tpu.memory_space<vmem>>, vector<8x64xbf16>
    %2 = arith.extf %1 : vector<8x64xbf16> to vector<8x64xf32>
    %c0_3 = arith.constant 0 : index
    %c0_4 = arith.constant 0 : index
    %3 = vector.load %arg6[%c0_3, %c0_4] : memref<8x64xbf16, #tpu.memory_space<vmem>>, vector<8x64xbf16>
    %4 = arith.extf %3 : vector<8x64xbf16> to vector<8x64xf32>
    %c0_5 = arith.constant 0 : index
    %c0_6 = arith.constant 0 : index
    %5 = vector.load %arg2[%c0_5, %c0_6] : memref<32x192xbf16, #tpu.memory_space<vmem>>, vector<32x192xbf16>
    %c0_7 = arith.constant 0 : index
    %c0_8 = arith.constant 0 : index
    %6 = vector.load %arg3[%c0_7, %c0_8] : memref<1x192xf32, #tpu.memory_space<vmem>>, vector<1x192xf32>
    %7 = vector.extract_strided_slice %0 {offsets = [0, 0], sizes = [8, 32], strides = [1, 1]} : vector<8x64xbf16> to vector<8x32xbf16>
    %cst = arith.constant dense<0.000000e+00> : vector<8x192xf32>
    %8 = tpu.matmul %7, %5, %cst {dimension_numbers = #tpu.dot_dimension_numbers<[1], [0], [0], [1], [0, 0, 1, 1], [], []>} : vector<8x32xbf16>, vector<32x192xbf16>, vector<8x192xf32> -> vector<8x192xf32>
    %9 = vector.broadcast %6 : vector<1x192xf32> to vector<8x192xf32>
    %10 = arith.addf %8, %9 : vector<8x192xf32>
    %11 = vector.extract_strided_slice %2 {offsets = [0, 0], sizes = [8, 32], strides = [1, 1]} : vector<8x64xf32> to vector<8x32xf32>
    %12 = vector.extract_strided_slice %4 {offsets = [0, 0], sizes = [8, 32], strides = [1, 1]} : vector<8x64xf32> to vector<8x32xf32>
    %13 = vector.extract_strided_slice %10 {offsets = [0, 0], sizes = [8, 32], strides = [1, 1]} : vector<8x192xf32> to vector<8x32xf32>
    %14 = arith.mulf %13, %11 : vector<8x32xf32>
    %15 = vector.extract_strided_slice %10 {offsets = [0, 64], sizes = [8, 32], strides = [1, 1]} : vector<8x192xf32> to vector<8x32xf32>
    %16 = arith.mulf %15, %12 : vector<8x32xf32>
    %17 = arith.addf %14, %16 : vector<8x32xf32>
    %18 = arith.truncf %17 : vector<8x32xf32> to vector<8x32xbf16>
    %19 = vector.extract_strided_slice %10 {offsets = [0, 32], sizes = [8, 32], strides = [1, 1]} : vector<8x192xf32> to vector<8x32xf32>
    %20 = arith.mulf %19, %11 : vector<8x32xf32>
    %21 = vector.extract_strided_slice %10 {offsets = [0, 96], sizes = [8, 32], strides = [1, 1]} : vector<8x192xf32> to vector<8x32xf32>
    %22 = arith.mulf %21, %12 : vector<8x32xf32>
    %23 = arith.addf %20, %22 : vector<8x32xf32>
    %24 = arith.truncf %23 : vector<8x32xf32> to vector<8x32xbf16>
    %25 = vector.extract_strided_slice %10 {offsets = [0, 128], sizes = [8, 64], strides = [1, 1]} : vector<8x192xf32> to vector<8x64xf32>
    %26 = vector.extract_strided_slice %0 {offsets = [0, 32], sizes = [8, 32], strides = [1, 1]} : vector<8x64xbf16> to vector<8x32xbf16>
    %cst_9 = arith.constant dense<0.000000e+00> : vector<8x192xf32>
    %27 = tpu.matmul %26, %5, %cst_9 {dimension_numbers = #tpu.dot_dimension_numbers<[1], [0], [0], [1], [0, 0, 1, 1], [], []>} : vector<8x32xbf16>, vector<32x192xbf16>, vector<8x192xf32> -> vector<8x192xf32>
    %28 = vector.broadcast %6 : vector<1x192xf32> to vector<8x192xf32>
    %29 = arith.addf %27, %28 : vector<8x192xf32>
    %30 = vector.extract_strided_slice %2 {offsets = [0, 32], sizes = [8, 32], strides = [1, 1]} : vector<8x64xf32> to vector<8x32xf32>
    %31 = vector.extract_strided_slice %4 {offsets = [0, 32], sizes = [8, 32], strides = [1, 1]} : vector<8x64xf32> to vector<8x32xf32>
    %32 = vector.extract_strided_slice %29 {offsets = [0, 0], sizes = [8, 32], strides = [1, 1]} : vector<8x192xf32> to vector<8x32xf32>
    %33 = arith.mulf %32, %30 : vector<8x32xf32>
    %34 = vector.extract_strided_slice %29 {offsets = [0, 64], sizes = [8, 32], strides = [1, 1]} : vector<8x192xf32> to vector<8x32xf32>
    %35 = arith.mulf %34, %31 : vector<8x32xf32>
    %36 = arith.addf %33, %35 : vector<8x32xf32>
    %37 = arith.truncf %36 : vector<8x32xf32> to vector<8x32xbf16>
    %38 = vector.extract_strided_slice %29 {offsets = [0, 32], sizes = [8, 32], strides = [1, 1]} : vector<8x192xf32> to vector<8x32xf32>
    %39 = arith.mulf %38, %30 : vector<8x32xf32>
    %40 = vector.extract_strided_slice %29 {offsets = [0, 96], sizes = [8, 32], strides = [1, 1]} : vector<8x192xf32> to vector<8x32xf32>
    %41 = arith.mulf %40, %31 : vector<8x32xf32>
    %42 = arith.addf %39, %41 : vector<8x32xf32>
    %43 = arith.truncf %42 : vector<8x32xf32> to vector<8x32xbf16>
    %44 = vector.extract_strided_slice %29 {offsets = [0, 128], sizes = [8, 64], strides = [1, 1]} : vector<8x192xf32> to vector<8x64xf32>
    %45 = vector.extract_strided_slice %18 {offsets = [0, 0], sizes = [8, 16], strides = [1, 1]} : vector<8x32xbf16> to vector<8x16xbf16>
    %46 = vector.extract_strided_slice %24 {offsets = [0, 0], sizes = [8, 16], strides = [1, 1]} : vector<8x32xbf16> to vector<8x16xbf16>
    %cst_10 = arith.constant dense<0.000000e+00> : vector<8x8xf32>
    %47 = tpu.matmul %45, %46, %cst_10 {dimension_numbers = #tpu.dot_dimension_numbers<[1], [1], [0], [0], [0, 0, 1, 0], [], []>} : vector<8x16xbf16>, vector<8x16xbf16>, vector<8x8xf32> -> vector<8x8xf32>
    %48 = vector.extract_strided_slice %18 {offsets = [0, 16], sizes = [8, 16], strides = [1, 1]} : vector<8x32xbf16> to vector<8x16xbf16>
    %49 = vector.extract_strided_slice %24 {offsets = [0, 16], sizes = [8, 16], strides = [1, 1]} : vector<8x32xbf16> to vector<8x16xbf16>
    %cst_11 = arith.constant dense<0.000000e+00> : vector<8x8xf32>
    %50 = tpu.matmul %48, %49, %cst_11 {dimension_numbers = #tpu.dot_dimension_numbers<[1], [1], [0], [0], [0, 0, 1, 0], [], []>} : vector<8x16xbf16>, vector<8x16xbf16>, vector<8x8xf32> -> vector<8x8xf32>
    %51 = vector.extract_strided_slice %37 {offsets = [0, 0], sizes = [8, 16], strides = [1, 1]} : vector<8x32xbf16> to vector<8x16xbf16>
    %52 = vector.extract_strided_slice %43 {offsets = [0, 0], sizes = [8, 16], strides = [1, 1]} : vector<8x32xbf16> to vector<8x16xbf16>
    %cst_12 = arith.constant dense<0.000000e+00> : vector<8x8xf32>
    %53 = tpu.matmul %51, %52, %cst_12 {dimension_numbers = #tpu.dot_dimension_numbers<[1], [1], [0], [0], [0, 0, 1, 0], [], []>} : vector<8x16xbf16>, vector<8x16xbf16>, vector<8x8xf32> -> vector<8x8xf32>
    %54 = vector.extract_strided_slice %37 {offsets = [0, 16], sizes = [8, 16], strides = [1, 1]} : vector<8x32xbf16> to vector<8x16xbf16>
    %55 = vector.extract_strided_slice %43 {offsets = [0, 16], sizes = [8, 16], strides = [1, 1]} : vector<8x32xbf16> to vector<8x16xbf16>
    %cst_13 = arith.constant dense<0.000000e+00> : vector<8x8xf32>
    %56 = tpu.matmul %54, %55, %cst_13 {dimension_numbers = #tpu.dot_dimension_numbers<[1], [1], [0], [0], [0, 0, 1, 0], [], []>} : vector<8x16xbf16>, vector<8x16xbf16>, vector<8x8xf32> -> vector<8x8xf32>
    %57 = tpu.concatenate %47, %50, %53, %56 in 0 : vector<8x8xf32>, vector<8x8xf32>, vector<8x8xf32>, vector<8x8xf32> -> vector<32x8xf32>
    %cst_14 = arith.constant 2.500000e-01 : f32
    %58 = vector.broadcast %cst_14 : f32 to vector<32x8xf32>
    %59 = arith.mulf %57, %58 : vector<32x8xf32>
    %c0_15 = arith.constant 0 : index
    %c0_16 = arith.constant 0 : index
    %60 = vector.load %arg7[%c0_15, %c0_16] : memref<32x8xf32, #tpu.memory_space<vmem>>, vector<32x8xf32>
    %61 = arith.addf %59, %60 : vector<32x8xf32>
    %cst_17 = arith.constant dense<0xFF800000> : vector<32xf32>
    %62 = vector.multi_reduction <maximumf>, %61, %cst_17 [1] : vector<32x8xf32> to vector<32xf32>
    %63 = vector.shape_cast %62 : vector<32xf32> to vector<32x1xf32>
    %64 = vector.broadcast %63 : vector<32x1xf32> to vector<32x8xf32>
    %65 = arith.subf %61, %64 : vector<32x8xf32>
    %66 = math.exp %65 : vector<32x8xf32>
    %cst_18 = arith.constant dense<0.000000e+00> : vector<32xf32>
    %67 = vector.multi_reduction <add>, %66, %cst_18 [1] : vector<32x8xf32> to vector<32xf32>
    %68 = vector.shape_cast %67 : vector<32xf32> to vector<32x1xf32>
    %69 = tpu.reciprocal %68 {approx = true} : vector<32x1xf32> -> vector<32x1xf32>
    %70 = vector.broadcast %69 : vector<32x1xf32> to vector<32x8xf32>
    %71 = arith.mulf %66, %70 : vector<32x8xf32>
    %cst_19 = arith.constant 0.000000e+00 : f32
    %72 = vector.broadcast %cst_19 : f32 to vector<8x32xf32>
    %73 = vector.extract_strided_slice %71 {offsets = [0, 0], sizes = [8, 8], strides = [1, 1]} : vector<32x8xf32> to vector<8x8xf32>
    %74 = arith.truncf %73 : vector<8x8xf32> to vector<8x8xbf16>
    %75 = vector.extract_strided_slice %25 {offsets = [0, 0], sizes = [8, 32], strides = [1, 1]} : vector<8x64xf32> to vector<8x32xf32>
    %76 = arith.truncf %75 : vector<8x32xf32> to vector<8x32xbf16>
    %cst_20 = arith.constant dense<0.000000e+00> : vector<8x32xf32>
    %77 = tpu.matmul %74, %76, %cst_20 {dimension_numbers = #tpu.dot_dimension_numbers<[1], [0], [0], [1], [0, 0, 1, 1], [], []>} : vector<8x8xbf16>, vector<8x32xbf16>, vector<8x32xf32> -> vector<8x32xf32>
    %78 = arith.addf %72, %77 : vector<8x32xf32>
    %79 = vector.extract_strided_slice %71 {offsets = [8, 0], sizes = [8, 8], strides = [1, 1]} : vector<32x8xf32> to vector<8x8xf32>
    %80 = arith.truncf %79 : vector<8x8xf32> to vector<8x8xbf16>
    %81 = vector.extract_strided_slice %25 {offsets = [0, 32], sizes = [8, 32], strides = [1, 1]} : vector<8x64xf32> to vector<8x32xf32>
    %82 = arith.truncf %81 : vector<8x32xf32> to vector<8x32xbf16>
    %cst_21 = arith.constant dense<0.000000e+00> : vector<8x32xf32>
    %83 = tpu.matmul %80, %82, %cst_21 {dimension_numbers = #tpu.dot_dimension_numbers<[1], [0], [0], [1], [0, 0, 1, 1], [], []>} : vector<8x8xbf16>, vector<8x32xbf16>, vector<8x32xf32> -> vector<8x32xf32>
    %84 = arith.addf %78, %83 : vector<8x32xf32>
    %c0_22 = arith.constant 0 : index
    %c0_23 = arith.constant 0 : index
    %85 = vector.load %arg4[%c0_22, %c0_23] : memref<1x32xf32, #tpu.memory_space<vmem>>, vector<1x32xf32>
    %86 = vector.broadcast %85 : vector<1x32xf32> to vector<8x32xf32>
    %87 = arith.addf %84, %86 : vector<8x32xf32>
    %cst_24 = arith.constant 0.000000e+00 : f32
    %88 = vector.broadcast %cst_24 : f32 to vector<8x32xf32>
    %89 = vector.extract_strided_slice %71 {offsets = [16, 0], sizes = [8, 8], strides = [1, 1]} : vector<32x8xf32> to vector<8x8xf32>
    %90 = arith.truncf %89 : vector<8x8xf32> to vector<8x8xbf16>
    %91 = vector.extract_strided_slice %44 {offsets = [0, 0], sizes = [8, 32], strides = [1, 1]} : vector<8x64xf32> to vector<8x32xf32>
    %92 = arith.truncf %91 : vector<8x32xf32> to vector<8x32xbf16>
    %cst_25 = arith.constant dense<0.000000e+00> : vector<8x32xf32>
    %93 = tpu.matmul %90, %92, %cst_25 {dimension_numbers = #tpu.dot_dimension_numbers<[1], [0], [0], [1], [0, 0, 1, 1], [], []>} : vector<8x8xbf16>, vector<8x32xbf16>, vector<8x32xf32> -> vector<8x32xf32>
    %94 = arith.addf %88, %93 : vector<8x32xf32>
    %95 = vector.extract_strided_slice %71 {offsets = [24, 0], sizes = [8, 8], strides = [1, 1]} : vector<32x8xf32> to vector<8x8xf32>
    %96 = arith.truncf %95 : vector<8x8xf32> to vector<8x8xbf16>
    %97 = vector.extract_strided_slice %44 {offsets = [0, 32], sizes = [8, 32], strides = [1, 1]} : vector<8x64xf32> to vector<8x32xf32>
    %98 = arith.truncf %97 : vector<8x32xf32> to vector<8x32xbf16>
    %cst_26 = arith.constant dense<0.000000e+00> : vector<8x32xf32>
    %99 = tpu.matmul %96, %98, %cst_26 {dimension_numbers = #tpu.dot_dimension_numbers<[1], [0], [0], [1], [0, 0, 1, 1], [], []>} : vector<8x8xbf16>, vector<8x32xbf16>, vector<8x32xf32> -> vector<8x32xf32>
    %100 = arith.addf %94, %99 : vector<8x32xf32>
    %c0_27 = arith.constant 0 : index
    %c0_28 = arith.constant 0 : index
    %101 = vector.load %arg4[%c0_27, %c0_28] : memref<1x32xf32, #tpu.memory_space<vmem>>, vector<1x32xf32>
    %102 = vector.broadcast %101 : vector<1x32xf32> to vector<8x32xf32>
    %103 = arith.addf %100, %102 : vector<8x32xf32>
    %104 = tpu.concatenate %87, %103 in 1 : vector<8x32xf32>, vector<8x32xf32> -> vector<8x64xf32>
    %105 = arith.truncf %104 : vector<8x64xf32> to vector<8x64xbf16>
    %c0_29 = arith.constant 0 : index
    %c0_30 = arith.constant 0 : index
    %106 = vector.load %arg8[%c0_29, %c0_30] : memref<8x64xbf16, #tpu.memory_space<vmem>>, vector<8x64xbf16>
    tpu.vector_store %arg8[%c0_29, %c0_30], %105 {strides = array<i32>} : memref<8x64xbf16, #tpu.memory_space<vmem>>, vector<8x64xbf16>,
    return
  }
  func.func @transform_0(%arg0: i32) -> (i32, i32) {
    %c0_i32 = arith.constant 0 : i32
    %c0_i32_0 = arith.constant 0 : i32
    %c0_i32_1 = arith.constant 0 : i32
    return %c0_i32, %c0_i32_0 : i32, i32
  }
  func.func @transform_1(%arg0: i32) -> (i32, i32) {
    %c0_i32 = arith.constant 0 : i32
    %c0_i32_0 = arith.constant 0 : i32
    %c0_i32_1 = arith.constant 0 : i32
    return %c0_i32, %c0_i32_0 : i32, i32
  }
  func.func @transform_2(%arg0: i32) -> (i32, i32) {
    %c0_i32 = arith.constant 0 : i32
    %c0_i32_0 = arith.constant 0 : i32
    %c0_i32_1 = arith.constant 0 : i32
    return %c0_i32, %c0_i32_0 : i32, i32
  }
  func.func @transform_3(%arg0: i32) -> (i32, i32) {
    %c0_i32 = arith.constant 0 : i32
    %c0_i32_0 = arith.constant 0 : i32
    %c0_i32_1 = arith.constant 0 : i32
    return %c0_i32, %c0_i32_0 : i32, i32
  }
  func.func @transform_4(%arg0: i32) -> (i32, i32) {
    %c0_i32 = arith.constant 0 : i32
    %c0_i32_0 = arith.constant 0 : i32
    %c0_i32_1 = arith.constant 0 : i32
    return %c0_i32, %c0_i32_0 : i32, i32
  }
  func.func @transform_5(%arg0: i32) -> (i32, i32) {
    %c0_i32 = arith.constant 0 : i32
    %c0_i32_0 = arith.constant 0 : i32
    %c0_i32_1 = arith.constant 0 : i32
    return %c0_i32, %c0_i32_0 : i32, i32
  }
  func.func @transform_6(%arg0: i32) -> (i32, i32) {
    %c0_i32 = arith.constant 0 : i32
    %c0_i32_0 = arith.constant 0 : i32
    %c0_i32_1 = arith.constant 0 : i32
    return %c0_i32, %c0_i32_0 : i32, i32
  }
  func.func @transform_7(%arg0: i32) -> (i32, i32) {
    %c0_i32 = arith.constant 0 : i32
    %c0_i32_0 = arith.constant 0 : i32
    %c0_i32_1 = arith.constant 0 : i32
    return %c0_i32, %c0_i32_0 : i32, i32
  }
}

</mosaic_0001>

<bundles_post_ra>
// kernel: glm_mha_forward.1
= control target key start
LH: loop header
LB: loop body
LE: loop exit
PB: predicated region body
PF: predicated region fallthrough
CT: control target
= control target key end

     0   :  { %s494_s18 = smov 96   ;;  %vm62_vm0 = vcmask 261120   ;;  %s495_s22 = smov 32   ;;  %vm180_vm1 = vcmask 130048   ;;  %vm342_vm2 = vcmask 1043456   ;;  %vm288_vm3 = vcmask 64512   ;;  %s653_s0 = inlined_call_operand.vmem [shape: bf16[8,64], index: 0, kind: input, shape index: {}]   ;;  %s654_s1 = inlined_call_operand.vmem [shape: bf16[32,192], index: 1, kind: input, shape index: {}]   ;;  %s655_s5 = inlined_call_operand.vmem [shape: bf16[8,64], index: 5, kind: input, shape index: {}]   ;;  %s656_s4 = inlined_call_operand.vmem [shape: bf16[8,64], index: 4, kind: input, shape index: {}]   ;;  %s657_s2 = inlined_call_operand.vmem [shape: f32[1,192], index: 2, kind: input, shape index: {}]   ;;  %s658_s6 = inlined_call_operand.vmem [shape: f32[32,8], index: 6, kind: input, shape index: {}]   ;;  %s659_s3 = inlined_call_operand.vmem [shape: f32[1,32], index: 3, kind: input, shape index: {}]   ;;  %s660_s7 = inlined_call_operand.vmem [shape: bf16[8,64], index: 7, kind: output, shape index: {}]  }
   0x1   :  { %v27_v0 = vld [vmem:[%s653_s0] sm:$0xf]  ;;  %v450_v1 = vld [vmem:[%s654_s1 + $0x10] sm:$0xf]  ;;  %v471_v2 = vld [vmem:[%s654_s1 + $0x14] sm:$0xf0] }
   0x2   :  { %v120_v3 = vunpack.c.l.b16 %v27_v0  ;;  %v451_v4 = vor.u32 %v471_v2, %v450_v1  ;;  %v470_v5 = vld [vmem:[%s654_s1 + $0x14] sm:$0xf]  ;;  %v452_v6 = vld [vmem:[%s654_s1 + $0x18] sm:$0xf0]  ;;  %v442_v7 = vld [vmem:[%s654_s1] sm:$0xf] }
   0x3   :  { %v455_v8 = vor.u32 %v470_v5, %v452_v6  ;;  %v469_v9 = vld [vmem:[%s654_s1 + $0x4] sm:$0xf0]  ;;  %v468_v10 = vld [vmem:[%s654_s1 + $0x4] sm:$0xf]  ;;  %v444_v11 = vld [vmem:[%s654_s1 + $0x8] sm:$0xf0] }
   0x4   :  { %v121_v12 = vpack.c.b16 %v120_v3, %v120_v3  ;;  %133 = vmatpush.bf16.msra.mxu2 %v451_v4  ;;  %v443_v13 = vor.u32 %v469_v9, %v442_v7  ;;  %72 = vmatpush.bf16.msra.mxu0 %v451_v4  ;;  %v447_v14 = vor.u32 %v468_v10, %v444_v11  ;;  %v30_v15 = vld [vmem:[%s655_s5] sm:$0xf]  ;;  %s496_s23 = smov 64   ;;  %s498_s24 = smov 80   ;;  %vm434_vm4 = vcmask 519168  }
   0x5   :  { %146 = vmatpush.bf16.msra.mxu3 %v455_v8  ;;  %85 = vmatpush.bf16.msra.mxu1 %v455_v8  ;;  %v28_v16 = vld [vmem:[%s656_s4] sm:$0xf]  ;;  %v31_v17 = vunpack.c.l.bf16 %v30_v15 }
   0x6   :  { %122 = vrot.lane.b32.xlu0 %v121_v12, %s494_s18  ;;  %v29_v18 = vunpack.c.l.bf16 %v28_v16  ;;  %v585_v20 = vld [vmem:[%s657_s2] sm:$0x3]  ;;  %s497_s2 = smov 112   ;;  %v283_v12 = vld [vmem:[%s658_s6 + $0x18] sm:$0xff] }
   0x7   :  { %157 = vrot.lane.b32.xlu1 %v31_v17, %s495_s22  ;;  %v38_v22 = vperm.slane %v585_v20, 0  ;;  %v39_v57 = vperm.slane %v585_v20, 1 }
   0x8   :  { %134 = vmatpush.bf16.msra.mxu2 %v443_v13  ;;  %73 = vmatpush.bf16.msra.mxu0 %v443_v13 }
   0x9   :  { %147 = vmatpush.bf16.msra.mxu3 %v447_v14  ;;  %86 = vmatpush.bf16.msra.mxu1 %v447_v14 }
   0xa   :  { %153 = vrot.lane.b32.xlu2 %v29_v18, %s494_s18 }
   0xb   :  { %456 = vmatmul.msk.bf16.vlgmr.msra.gmra.mxu0 %vm62_vm0, %v27_v0 }
   0xc   :  { %457 = vmatmul.msk.bf16.vlgmr.msra.gmra.mxu1 %vm62_vm0, %v27_v0 }
   0xe   :  { %94 = vrot.lane.b32.xlu0 %v31_v17, %s496_s23 }
  0x16   :  { %109 = vrot.lane.b32.xlu0 %v31_v17, %s494_s18 }
  0x1e   :  { %105 = vrot.lane.b32.xlu0 %v29_v18, %s495_s22 }
  0x64   :  { %v154_v43 = vpop.permute.xlu2 %153 }
  0x78   :  { %v123_v19 = vpop.permute.xlu0 %122 }
  0x79   :  { %458 = vmatmul.msk.bf16.vlgmr.msra.gmra.mxu2 %vm62_vm0, %v123_v19  ;;  %459 = vmatmul.msk.bf16.vlgmr.msra.gmra.mxu3 %vm62_vm0, %v123_v19  ;;  %v158_v27 = vpop.permute.xlu1 %157 }
  0x80   :  { %v95_v24 = vpop.permute.xlu0 %94 }
  0x88   :  { %v75_v21 = vpop.f32.mrf.mxu0  ;;  %v110_v35 = vpop.permute.xlu0 %109 }
  0x89   :  { %v76_v23 = vadd.f32 %v75_v21, %v38_v22  ;;  %v88_v13 = vpop.f32.mrf.mxu1 }
  0x8a   :  { %v89_v15 = vadd.f32 %v88_v13, %v39_v57 }
  0x8b   :  { %v97_v26 = vmul.f32 %v95_v24, %v76_v23  ;;  %v92_v37 = vmul.f32 %v76_v23, %v29_v18  ;;  %v112_v55 = vmul.f32 %v110_v35, %v76_v23 }
  0x8c   :  { %v611_v17 = vpack.c.bf16 %v89_v15, %v89_v15 }
  0x8d   :  { %99 = vrot.lane.b32.xlu0 %v97_v26, %s496_s23 }
  0x8e   :  { %v363_v19 = vsel %vm342_vm2, %v611_v17, 0 }
  0x90   :  { %v77_v25 = vpop.f32.mrf.mxu0  ;;  %v106_v36 = vpop.permute.xlu0 %105 }
  0x91   :  { %v108_v2 = vmul.f32 %v106_v36, %v76_v23  ;;  %v90_v21 = vpop.f32.mrf.mxu1  ;;  %v282_v25 = vld [vmem:[%s658_s6 + $0x10] sm:$0xff] }
  0xfc   :  { %v136_v28 = vpop.f32.mrf.mxu2  ;;  %v149_v29 = vpop.f32.mrf.mxu3 }
  0xfd   :  { %v137_v30 = vadd.f32 %v136_v28, %v38_v22  ;;  %v150_v58 = vadd.f32 %v149_v29, %v39_v57 }
  0xff   :  { %v160_v31 = vmul.f32 %v158_v27, %v137_v30  ;;  %v168_v32 = vmul.f32 %v137_v30, %v95_v24  ;;  %v100_v38 = vpop.permute.xlu0 %99  ;;  %v167_v44 = vmul.f32 %v137_v30, %v29_v18  ;;  %v156_v47 = vmul.f32 %v154_v43, %v137_v30 }
 0x100   :  { %v102_v39 = vadd.f32 %v100_v38, %v92_v37  ;;  %v597_v59 = vpack.c.bf16 %v150_v58, %v150_v58 }
 0x101   :  { %162 = vrot.lane.b32.xlu2 %v160_v31, %s496_s23  ;;  %170 = vrot.lane.b32.xlu1 %v168_v32, %s496_s23 }
 0x102   :  { %v591_v40 = vpack.c.bf16 %v102_v39, %v102_v39  ;;  %v412_v62 = vsel %vm342_vm2, %v597_v59, 0 }
 0x104   :  { %v138_v33 = vpop.f32.mrf.mxu2  ;;  %v151_v34 = vpop.f32.mrf.mxu3  ;;  %v201_v41 = vunpack.c.l.b16 %v591_v40 }
 0x105   :  { %v281_v34 = vld [vmem:[%s658_s6 + $0x8] sm:$0xff] }
 0x106   :  { %v202_v42 = vpack.c.b16 %v201_v41, %v201_v41 }
 0x108   :  { %203 = vrot.lane.b32.xlu0 %v202_v42, %s497_s2 }
 0x15b   :  { %v163_v45 = vpop.permute.xlu2 %162 }
 0x15c   :  { %v165_v49 = vadd.f32 %v163_v45, %v156_v47  ;;  %v280_v45 = vld [vmem:[%s658_s6] sm:$0xff] }
 0x15e   :  { %v166_v52 = vpack.c.bf16 %v165_v49, %v165_v49 }
 0x160   :  { %v251_v54 = vunpack.c.l.b16 %v166_v52 }
 0x162   :  { %v252_v56 = vpack.c.b16 %v251_v54, %v251_v54 }
 0x173   :  { %v171_v46 = vpop.permute.xlu1 %170 }
 0x174   :  { %v173_v48 = vadd.f32 %v171_v46, %v167_v44 }
 0x176   :  { %v174_v50 = vpack.c.bf16 %v173_v48, %v173_v48 }
 0x178   :  { %v227_v51 = vunpack.c.l.b16 %v174_v50 }
 0x17a   :  { %v228_v53 = vpack.c.b16 %v227_v51, %v227_v51  ;;  %v204_v10 = vpop.permute.xlu0 %203 }
 0x17c   :  { %255 = vrot.lane.b32.xlu2 %v228_v53, %s498_s24  ;;  %229 = vrot.lane.b32.xlu1 %v228_v53, %s494_s18 }
 0x184   :  { %253 = vrot.lane.b32.xlu2 %v252_v56, %s497_s2  ;;  %114 = vrot.lane.b32.xlu1 %v112_v55, %s496_s23 }
 0x1d6   :  { %v256_v60 = vpop.permute.xlu2 %255 }
 0x1d7   :  { %v261_v61 = vsel %vm180_vm1, %v256_v60, 0 }
 0x1d8   :  { %270 = vmatpush.bf16.xpose.msrb.mxu3 %v261_v61 }
 0x1de   :  { %v254_v63 = vpop.permute.xlu2 %253 }
 0x1df   :  { %463 = vmatmul.msk.bf16.vlgmr.msrb.gmra.mxu3 %vm180_vm1, %v254_v63 }
 0x1e0   :  { %421 = vmatpush.bf16.msra.mxu3 %v412_v62 }
 0x1ee   :  { %v230_v0 = vpop.permute.xlu1 %229 }
 0x1ef   :  { %v235_v1 = vsel %vm180_vm1, %v230_v0, 0 }
 0x1f0   :  { %244 = vmatpush.bf16.xpose.msrb.mxu2 %v235_v1 }
 0x1f6   :  { %v115_v3 = vpop.permute.xlu1 %114 }
 0x1f7   :  { %v117_v4 = vadd.f32 %v115_v3, %v108_v2  ;;  %462 = vmatmul.msk.bf16.vlgmr.msrb.gmra.mxu2 %vm180_vm1, %v166_v52 }
 0x1f9   :  { %v118_v5 = vpack.c.bf16 %v117_v4, %v117_v4 }
 0x1fb   :  { %v176_v6 = vunpack.c.l.b16 %v118_v5 }
 0x1fd   :  { %v177_v7 = vpack.c.b16 %v176_v6, %v176_v6 }
 0x1ff   :  { %205 = vrot.lane.b32.xlu2 %v177_v7, %s498_s24  ;;  %178 = vrot.lane.b32.xlu1 %v177_v7, %s494_s18 }
 0x259   :  { %v206_v8 = vpop.permute.xlu2 %205 }
 0x25a   :  { %v211_v9 = vsel %vm180_vm1, %v206_v8, 0 }
 0x25b   :  { %220 = vmatpush.bf16.xpose.msrb.mxu1 %v211_v9 }
 0x262   :  { %461 = vmatmul.msk.bf16.vlgmr.msrb.gmra.mxu1 %vm180_vm1, %v204_v10  ;;  %v272_v11 = vpop.f32.mrf.mxu3 }
 0x263   :  { %v279_v14 = vmul.f32 0.25, %v272_v11  ;;  %372 = vmatpush.bf16.msra.mxu1 %v363_v19 }
 0x265   :  { %v287_v16 = vadd.f32 %v283_v12, %v279_v14 }
 0x267   :  { %v298_v18 = vsel %vm288_vm3, %v287_v16, -inf }
 0x268   :  { %299 = vmax.xlane.f32.xlu2 %v298_v18 }
 0x26a   :  { %v274_v20 = vpop.f32.mrf.mxu3 }
 0x271   :  { %v179_v22 = vpop.permute.xlu1 %178 }
 0x272   :  { %v185_v23 = vsel %vm180_vm1, %v179_v22, 0 }
 0x273   :  { %194 = vmatpush.bf16.xpose.msrb.mxu0 %v185_v23 }
 0x27a   :  { %460 = vmatmul.msk.bf16.vlgmr.msrb.gmra.mxu0 %vm180_vm1, %v591_v40  ;;  %v246_v24 = vpop.f32.mrf.mxu2 }
 0x27b   :  { %v278_v26 = vmul.f32 0.25, %v246_v24 }
 0x27d   :  { %v286_v27 = vadd.f32 %v282_v25, %v278_v26 }
 0x27f   :  { %v295_v28 = vsel %vm288_vm3, %v286_v27, -inf }
 0x280   :  { %296 = vmax.xlane.f32.xlu1 %v295_v28 }
 0x282   :  { %v248_v29 = vpop.f32.mrf.mxu2 }
 0x2db   :  { %v300_v30 = vpop.xlane.xlu2 %299 }
 0x2dc   :  { %v304_v31 = vsub.f32 %v287_v16, %v300_v30 }
 0x2de   :  { %v311_v32 = vmul.f32 1.442695, %v304_v31 }
 0x2df   :  { %v222_v33 = vpop.f32.mrf.mxu1 }
 0x2e0   :  { %v277_v35 = vmul.f32 0.25, %v222_v33  ;;  %478 = vpow2.f32 %v311_v32 }
 0x2e2   :  { %v285_v36 = vadd.f32 %v281_v34, %v277_v35 }
 0x2e4   :  { %v292_v37 = vsel %vm288_vm3, %v285_v36, -inf }
 0x2e5   :  { %293 = vmax.xlane.f32.xlu2 %v292_v37 }
 0x2e6   :  { %v479_v39 = vpop.eup %478 }
 0x2e7   :  { %v224_v38 = vpop.f32.mrf.mxu1  ;;  %v322_v40 = vsel %vm288_vm3, %v479_v39, 0.0 }
 0x2ed   :  { %323 = vadd.xlane.f32.xlu2 %v322_v40 }
 0x2f3   :  { %v297_v41 = vpop.xlane.xlu1 %296 }
 0x2f4   :  { %v303_v42 = vsub.f32 %v286_v27, %v297_v41 }
 0x2f6   :  { %v309_v43 = vmul.f32 1.442695, %v303_v42 }
 0x2f7   :  { %v196_v44 = vpop.f32.mrf.mxu0 }
 0x2f8   :  { %480 = vpow2.f32 %v309_v43  ;;  %v276_v46 = vmul.f32 0.25, %v196_v44 }
 0x2fa   :  { %v284_v47 = vadd.f32 %v280_v45, %v276_v46 }
 0x2fc   :  { %v289_v48 = vsel %vm288_vm3, %v284_v47, -inf }
 0x2fd   :  { %290 = vmax.xlane.f32.xlu0 %v289_v48 }
 0x2fe   :  { %v481_v49 = vpop.eup %480 }
 0x2ff   :  { %v198_v50 = vpop.f32.mrf.mxu0  ;;  %v319_v51 = vsel %vm288_vm3, %v481_v49, 0.0 }
 0x300   :  { %320 = vadd.xlane.f32.xlu1 %v319_v51 }
 0x311   :  { %387 = vrot.lane.b32.xlu0 %v597_v59, %s494_s18 }
 0x358   :  { %v294_v52 = vpop.xlane.xlu2 %293 }
 0x359   :  { %v302_v53 = vsub.f32 %v285_v36, %v294_v52 }
 0x35b   :  { %v307_v54 = vmul.f32 1.442695, %v302_v53 }
 0x35d   :  { %482 = vpow2.f32 %v307_v54 }
 0x360   :  { %v324_v62 = vpop.xlane.xlu2 %323 }
 0x363   :  { %v483_v55 = vpop.eup %482 }
 0x364   :  { %v316_v56 = vsel %vm288_vm3, %v483_v55, 0.0 }
 0x365   :  { %317 = vadd.xlane.f32.xlu2 %v316_v56 }
 0x370   :  { %v291_v57 = vpop.xlane.xlu0 %290 }
 0x371   :  { %v301_v58 = vsub.f32 %v284_v47, %v291_v57 }
 0x373   :  { %v305_v60 = vmul.f32 1.442695, %v301_v58  ;;  %v321_v61 = vpop.xlane.xlu1 %320 }
 0x374   :  { %484 = vrcp.f32 %v321_v61 }
 0x375   :  { %486 = vpow2.f32 %v305_v60 }
 0x376   :  { %488 = vrcp.f32 %v324_v62 }
 0x37a   :  { %v485_v63 = vpop.eup %484 }
 0x37b   :  { %v487_v0 = vpop.eup %486  ;;  %v331_v1 = vmul.f32 %v485_v63, %v481_v49 }
 0x37c   :  { %v313_v59 = vsel %vm288_vm3, %v487_v0, 0.0  ;;  %v489_v3 = vpop.eup %488 }
 0x37d   :  { %v383_v2 = vpack.c.bf16 %v331_v1, %v331_v1  ;;  %314 = vadd.xlane.f32.xlu1 %v313_v59  ;;  %v332_v4 = vmul.f32 %v489_v3, %v479_v39 }
 0x37f   :  { %467 = vmatmul.msk.bf16.vlgmr.msra.gmra.mxu3 %vm288_vm3, %v383_v2  ;;  %v385_v7 = vpack.c.bf16 %v332_v4, %v332_v4 }
 0x383   :  { %v388_v5 = vpop.permute.xlu0 %387 }
 0x384   :  { %v393_v6 = vsel %vm342_vm2, %v388_v5, 0 }
 0x385   :  { %402 = vmatpush.bf16.msra.mxu2 %v393_v6 }
 0x388   :  { %466 = vmatmul.msk.bf16.vlgmr.msra.gmra.mxu2 %vm288_vm3, %v385_v7 }
 0x396   :  { %337 = vrot.lane.b32.xlu1 %v611_v17, %s494_s18  ;;  %v477_v17 = vld [vmem:[%s659_s3] ss:$0 sm:$0xff] }
 0x3d8   :  { %v318_v12 = vpop.xlane.xlu2 %317 }
 0x3f0   :  { %v315_v8 = vpop.xlane.xlu1 %314 }
 0x3f1   :  { %490 = vrcp.f32 %v315_v8 }
 0x3f2   :  { %492 = vrcp.f32 %v318_v12 }
 0x3f7   :  { %v491_v9 = vpop.eup %490 }
 0x3f8   :  { %v329_v10 = vmul.f32 %v491_v9, %v487_v0  ;;  %v493_v14 = vpop.eup %492 }
 0x3f9   :  { %v330_v15 = vmul.f32 %v493_v14, %v483_v55 }
 0x3fa   :  { %v333_v11 = vpack.c.bf16 %v329_v10, %v329_v10 }
 0x3fb   :  { %v335_v20 = vpack.c.bf16 %v330_v15, %v330_v15 }
 0x3fc   :  { %465 = vmatmul.msk.bf16.vlgmr.msra.gmra.mxu1 %vm288_vm3, %v333_v11 }
 0x402   :  { %v423_v13 = vpop.f32.mrf.mxu3 }
 0x408   :  { %v338_v16 = vpop.permute.xlu1 %337 }
 0x409   :  { %v344_v18 = vsel %vm342_vm2, %v338_v16, 0 }
 0x40a   :  { %353 = vmatpush.bf16.msra.mxu0 %v344_v18  ;;  %v425_v19 = vpop.f32.mrf.mxu3 }
 0x40b   :  { %v404_v21 = vpop.f32.mrf.mxu2 }
 0x40c   :  { %v424_v22 = vadd.f32 %v423_v13, %v404_v21 }
 0x40d   :  { %464 = vmatmul.msk.bf16.vlgmr.msra.gmra.mxu0 %vm288_vm3, %v335_v20 }
 0x40e   :  { %v427_v23 = vadd.f32 %v477_v17, %v424_v22 }
 0x410   :  { %429 = vrot.lane.b32.xlu2 %v427_v23, %s495_s22 }
 0x413   :  { %v406_v24 = vpop.f32.mrf.mxu2 }
 0x46a   :  { %v430_v30 = vpop.permute.xlu2 %429 }
 0x479   :  { %v374_v25 = vpop.f32.mrf.mxu1 }
 0x481   :  { %v376_v26 = vpop.f32.mrf.mxu1 }
 0x48a   :  { %v355_v27 = vpop.f32.mrf.mxu0 }
 0x48b   :  { %v375_v28 = vadd.f32 %v374_v25, %v355_v27 }
 0x48d   :  { %v382_v29 = vadd.f32 %v477_v17, %v375_v28 }
 0x48f   :  { %v432_v31 = vsel %vm62_vm0, %v382_v29, %v430_v30 }
 0x490   :  { %v433_v32 = vpack.c.bf16 %v432_v31, %v432_v31 }
 0x492   :  { %435 = vst.msk [vmem:[%s660_s7] sm:$0xf] %vm434_vm4, %v433_v32  ;;  %v357_v33 = vpop.f32.mrf.mxu0 }

</bundles_post_ra>
